<compile_context>
chip_gen: v7x
topology: tpu7x:2x2x1
jax: 0.10.0
libtpu: 0.0.40
codegen_flags: <defaults>
</compile_context>

<pallas_src>
import functools

import jax
import jax.numpy as jnp
from jax import lax
from jax.experimental import pallas as pl
from jax.experimental.pallas import tpu as pltpu


def _round_up(x, m):
    return ((x + m - 1) // m) * m


def _log_sigmoid(x):
    # numerically stable logsigmoid(x) = min(x, 0) - log(1 + exp(-|x|))
    return jnp.minimum(x, 0.0) - jnp.log(1.0 + jnp.exp(-jnp.abs(x)))


def _scalar_to_out_tile(s):
    """Put scalar s at [0, 0, 0] of a (1, 8, 128) tile, zeros elsewhere.

    The wrapper then reduces the whole partials array with one dense jnp.sum
    (no strided [:, 0, 0] slice)."""
    sub = lax.broadcasted_iota(jnp.int32, (1, 8, 128), 1)
    lane = lax.broadcasted_iota(jnp.int32, (1, 8, 128), 2)
    return jnp.where((sub == 0) & (lane == 0), s, 0.0)


# ---------------------------------------------------------------------------
# Pre-gather path kernels (small D): XLA gathers rows, Pallas streams blocks.
# ---------------------------------------------------------------------------
def _sg_softmax_pregather_kernel(c_ref, t_ref, outer_ref, out_ref,
                                 *, batch, batch_tile):
    base = pl.program_id(0) * batch_tile
    c = c_ref[...]                    # (TB, D) center embeddings
    t = t_ref[...]                    # (TB, D) target embeddings
    o = outer_ref[...]                # (K, D)  shared outer embeddings

    # norm_scores = center @ outer^T on the MXU (no (B,K,D) broadcast).
    norm = lax.dot_general(c, o, (((1,), (1,)), ((), ())),
                           preferred_element_type=jnp.float32)        # (TB, K)
    m = jnp.max(norm, axis=-1, keepdims=True)
    lse = m + jnp.log(jnp.sum(jnp.exp(norm - m), axis=-1, keepdims=True))

    scores = jnp.sum(t * c, axis=-1, keepdims=True)                   # (TB, 1)
    per_example = scores - lse

    row_ids = base + lax.broadcasted_iota(jnp.int32, (batch_tile, 1), 0)
    per_example = jnp.where(row_ids < batch, per_example, 0.0)
    out_ref[...] = _scalar_to_out_tile(jnp.sum(per_example))


def _sg_ns_pregather_kernel(c_ref, t_ref, out_ref, *, batch, batch_tile):
    base = pl.program_id(0) * batch_tile
    c = c_ref[...]
    t = t_ref[...]

    positive = jnp.sum(t * c, axis=-1, keepdims=True)    # <target, center>
    negative = jnp.sum(c * c, axis=-1, keepdims=True)    # ||center||^2
    terms = _log_sigmoid(positive) + _log_sigmoid(negative)

    row_ids = base + lax.broadcasted_iota(jnp.int32, (batch_tile, 1), 0)
    terms = jnp.where(row_ids < batch, terms, 0.0)
    out_ref[...] = _scalar_to_out_tile(jnp.sum(terms))


# ---------------------------------------------------------------------------
# Fused-gather path (large D): manual per-row HBM->VMEM DMA, double-buffered
# across grid steps, aggregate semaphore waits, partial compute overlap.
# ---------------------------------------------------------------------------
def _start_tile_gather(emb_v_hbm, emb_u_hbm, center_idx_ref, target_idx_ref,
                       c_buf, t_buf, sem_c, sem_t, base, slot, batch_tile):
    def issue(i, carry):
        ci = center_idx_ref[base + i]          # scalar reads from SMEM prefetch
        ti = target_idx_ref[base + i]
        pltpu.make_async_copy(
            emb_v_hbm.at[pl.ds(ci, 1)],        # (1, D) row in HBM
            c_buf.at[slot].at[pl.ds(i, 1)],    # (1, D) row of the VMEM slot
            sem_c.at[slot]).start()
        pltpu.make_async_copy(
            emb_u_hbm.at[pl.ds(ti, 1)],
            t_buf.at[slot].at[pl.ds(i, 1)],
            sem_t.at[slot]).start()
        return carry
    # Partial unroll: descriptor issue is the saturating slot on this path.
    lax.fori_loop(0, batch_tile, issue, None, unroll=8)


def _wait_slot(buf, sem, slot):
    # ONE aggregate wait: every (1, D) row copy into buf[slot] signalled
    # sem[slot]; a descriptor sized to the whole (TB, D) slot waits for the
    # sum of all of them at once (no per-row .wait() loop).
    pltpu.make_async_copy(buf.at[slot], buf.at[slot], sem.at[slot]).wait()


def _sg_softmax_fused_kernel(center_idx_ref, target_idx_ref,        # prefetch
                             emb_v_hbm, emb_u_hbm, outer_ref,       # inputs
                             out_ref,                               # output
                             c_buf, t_buf, sem_c, sem_t,            # scratch
                             *, batch, batch_tile):
    tile = pl.program_id(0)
    num_tiles = pl.num_programs(0)
    slot = lax.rem(tile, 2)

    # Prime the pipeline: the very first grid step gathers its own rows.
    @pl.when(tile == 0)
    def _():
        _start_tile_gather(emb_v_hbm, emb_u_hbm, center_idx_ref, target_idx_ref,
                           c_buf, t_buf, sem_c, sem_t,
                           base=0, slot=0, batch_tile=batch_tile)

    # Double-buffer: kick off tile i+1's gather (other slot) BEFORE any wait,
    # so the HBM row gather overlaps this tile's compute + next-tile latency.
    @pl.when(tile + 1 < num_tiles)
    def _():
        _start_tile_gather(emb_v_hbm, emb_u_hbm, center_idx_ref, target_idx_ref,
                           c_buf, t_buf, sem_c, sem_t,
                           base=(tile + 1) * batch_tile, slot=1 - slot,
                           batch_tile=batch_tile)

    # Partial overlap: norm/logsumexp only needs the center rows + the
    # resident outer block, so let the target-row gather keep flying.
    _wait_slot(c_buf, sem_c, slot)
    c = c_buf[slot]                   # (TB, D)
    o = outer_ref[...]                # (K, D)
    norm = lax.dot_general(c, o, (((1,), (1,)), ((), ())),
                           preferred_element_type=jnp.float32)        # (TB, K)
    m = jnp.max(norm, axis=-1, keepdims=True)
    lse = m + jnp.log(jnp.sum(jnp.exp(norm - m), axis=-1, keepdims=True))

    _wait_slot(t_buf, sem_t, slot)
    t = t_buf[slot]
    scores = jnp.sum(t * c, axis=-1, keepdims=True)                   # (TB, 1)

    per_example = scores - lse
    base = tile * batch_tile
    row_ids = base + lax.broadcasted_iota(jnp.int32, (batch_tile, 1), 0)
    per_example = jnp.where(row_ids < batch, per_example, 0.0)
    out_ref[...] = _scalar_to_out_tile(jnp.sum(per_example))


def _sg_ns_fused_kernel(center_idx_ref, target_idx_ref,
                        emb_v_hbm, emb_u_hbm,
                        out_ref,
                        c_buf, t_buf, sem_c, sem_t,
                        *, batch, batch_tile):
    tile = pl.program_id(0)
    num_tiles = pl.num_programs(0)
    slot = lax.rem(tile, 2)

    @pl.when(tile == 0)
    def _():
        _start_tile_gather(emb_v_hbm, emb_u_hbm, center_idx_ref, target_idx_ref,
                           c_buf, t_buf, sem_c, sem_t,
                           base=0, slot=0, batch_tile=batch_tile)

    @pl.when(tile + 1 < num_tiles)
    def _():
        _start_tile_gather(emb_v_hbm, emb_u_hbm, center_idx_ref, target_idx_ref,
                           c_buf, t_buf, sem_c, sem_t,
                           base=(tile + 1) * batch_tile, slot=1 - slot,
                           batch_tile=batch_tile)

    _wait_slot(c_buf, sem_c, slot)
    c = c_buf[slot]
    negative = jnp.sum(c * c, axis=-1, keepdims=True)    # only needs c

    _wait_slot(t_buf, sem_t, slot)
    t = t_buf[slot]
    positive = jnp.sum(t * c, axis=-1, keepdims=True)

    terms = _log_sigmoid(positive) + _log_sigmoid(negative)
    base = tile * batch_tile
    row_ids = base + lax.broadcasted_iota(jnp.int32, (batch_tile, 1), 0)
    terms = jnp.where(row_ids < batch, terms, 0.0)
    out_ref[...] = _scalar_to_out_tile(jnp.sum(terms))


# ---------------------------------------------------------------------------
# Wrapper (mirrors SkipGram.forward)
# ---------------------------------------------------------------------------
def skipgram_forward(emb_v, emb_u, center_words, target_words, outer_words, ns,
                     *, batch_tile=512, gather_mode="auto"):
    """Returns the scalar nll of SkipGram.forward.

    center_words : (B, 1) or (B,) int
    target_words : (B, 1) or (B,) int
    outer_words  : (K,) or (1, K) int (shared negatives / outer context words)
    gather_mode  : "auto" | "pregather" | "fused"
    """
    batch = int(center_words.shape[0])
    _, dim = emb_v.shape

    center_idx = center_words.reshape(batch).astype(jnp.int32)
    target_idx = target_words.reshape(batch).astype(jnp.int32)

    # VMEM budget (conservative for v7x's 64 MiB and v5e's 16 MiB default
    # scoped limit): double-buffered center+target tiles cost 16*TB*D bytes in
    # BOTH gather strategies; cap that at ~16 MiB and raise the scoped limit
    # to 32 MiB explicitly.
    tb_cap = max(8, (((16 * 1024 * 1024) // (16 * dim)) // 8) * 8)
    tb = _round_up(min(batch_tile, tb_cap, _round_up(batch, 8)), 8)
    num_tiles = -(-batch // tb)
    padded = num_tiles * tb
    vmem_limit = 32 * 1024 * 1024

    if gather_mode == "auto":
        # For small D the fused per-row DMA gather is descriptor-issue bound;
        # let XLA pre-gather and stream dense blocks instead.
        gather_mode = "fused" if dim >= 512 else "pregather"

    if not ns and outer_words.ndim == 2 and outer_words.shape[0] == batch and batch > 1:
        # TODO(synk): per-example (B, K) outer_words has no fused Pallas path
        # here; fall back to plain JAX for that rare case.
        c = emb_v[center_idx]
        t = emb_u[target_idx]
        o = emb_u[outer_words]
        scores = jnp.sum(t * c, axis=-1, keepdims=True)
        norm = jnp.sum(o * c[:, None, :], axis=-1)
        m = jnp.max(norm, axis=-1, keepdims=True)
        lse = m + jnp.log(jnp.sum(jnp.exp(norm - m), axis=-1, keepdims=True))
        return -jnp.mean(scores - lse)

    if padded != batch:
        center_idx_p = jnp.pad(center_idx, (0, padded - batch))
        target_idx_p = jnp.pad(target_idx, (0, padded - batch))
    else:
        center_idx_p, target_idx_p = center_idx, target_idx

    out_shape = jax.ShapeDtypeStruct((num_tiles, 8, 128), jnp.float32)

    if not ns:
        outer_idx = outer_words.reshape(-1).astype(jnp.int32)
        outer_emb = emb_u[outer_idx]              # (K, D): tiny shared gather
        k = outer_emb.shape[0]

    if gather_mode == "pregather":
        # XLA gathers the rows once in HBM; Pallas streams dense (TB, D)
        # blocks through the normal auto-pipelined BlockSpec path.
        c_g = emb_v[center_idx_p]                 # (padded, D)
        t_g = emb_u[target_idx_p]                 # (padded, D)

        cp = pltpu.CompilerParams(dimension_semantics=("parallel",),
                                  vmem_limit_bytes=vmem_limit)
        row_spec = pl.BlockSpec((tb, dim), lambda i: (i, 0))
        out_spec = pl.BlockSpec((1, 8, 128), lambda i: (i, 0, 0))

        if not ns:
            partials = pl.pallas_call(
                functools.partial(_sg_softmax_pregather_kernel,
                                  batch=batch, batch_tile=tb),
                out_shape=out_shape,
                grid_spec=pltpu.PrefetchScalarGridSpec(
                    num_scalar_prefetch=0, grid=(num_tiles,),
                    in_specs=[row_spec, row_spec,
                              pl.BlockSpec((k, dim), lambda i: (0, 0))],
                    out_specs=out_spec),
                compiler_params=cp,
            )(c_g, t_g, outer_emb)
        else:
            partials = pl.pallas_call(
                functools.partial(_sg_ns_pregather_kernel,
                                  batch=batch, batch_tile=tb),
                out_shape=out_shape,
                grid_spec=pltpu.PrefetchScalarGridSpec(
                    num_scalar_prefetch=0, grid=(num_tiles,),
                    in_specs=[row_spec, row_spec],
                    out_specs=out_spec),
                compiler_params=cp,
            )(c_g, t_g)
    else:
        # Fused in-kernel row gather, double-buffered across grid steps.
        # TODO(synk): for very large batches (B > ~100K) the scalar-prefetched
        # index arrays should be chunked (they live in SMEM).
        scratch = [
            pltpu.VMEM((2, tb, dim), emb_v.dtype),   # c_buf (2 slots)
            pltpu.VMEM((2, tb, dim), emb_u.dtype),   # t_buf (2 slots)
            pltpu.SemaphoreType.DMA((2,)),           # per-slot sems
            pltpu.SemaphoreType.DMA((2,)),
        ]
        # Cross-step double buffering needs sequential grid traversal on one
        # core, so this axis is "arbitrary" (the pre-gather path keeps
        # "parallel" for v7x dual-TC sharding).
        cp = pltpu.CompilerParams(dimension_semantics=("arbitrary",),
                                  vmem_limit_bytes=vmem_limit)
        out_spec = pl.BlockSpec((1, 8, 128), lambda i, *_: (i, 0, 0))

        if not ns:
            partials = pl.pallas_call(
                functools.partial(_sg_softmax_fused_kernel,
                                  batch=batch, batch_tile=tb),
                out_shape=out_shape,
                grid_spec=pltpu.PrefetchScalarGridSpec(
                    num_scalar_prefetch=2, grid=(num_tiles,),
                    in_specs=[pl.BlockSpec(memory_space=pl.ANY),   # emb_v in HBM
                              pl.BlockSpec(memory_space=pl.ANY),   # emb_u in HBM
                              pl.BlockSpec((k, dim), lambda i, *_: (0, 0))],
                    out_specs=out_spec,
                    scratch_shapes=scratch),
                compiler_params=cp,
            )(center_idx_p, target_idx_p, emb_v, emb_u, outer_emb)
        else:
            partials = pl.pallas_call(
                functools.partial(_sg_ns_fused_kernel,
                                  batch=batch, batch_tile=tb),
                out_shape=out_shape,
                grid_spec=pltpu.PrefetchScalarGridSpec(
                    num_scalar_prefetch=2, grid=(num_tiles,),
                    in_specs=[pl.BlockSpec(memory_space=pl.ANY),
                              pl.BlockSpec(memory_space=pl.ANY)],
                    out_specs=out_spec,
                    scratch_shapes=scratch),
                compiler_params=cp,
            )(center_idx_p, target_idx_p, emb_v, emb_u)

    # Only element [i, 0, 0] of each tile block is non-zero -> dense reduce.
    return -(jnp.sum(partials) / batch)


# ---------------------------------------------------------------------------
# Pure-JAX reference (mirrors the PyTorch math exactly) for verification
# ---------------------------------------------------------------------------
def skipgram_reference(emb_v, emb_u, center_words, target_words, outer_words, ns):
    batch = center_words.shape[0]
    c = emb_v[center_words.reshape(batch)]
    t = emb_u[target_words.reshape(batch)]
    scores = jnp.sum(t * c, axis=-1, keepdims=True)
    if not ns:
        ow = outer_words
        if ow.ndim == 1 or ow.shape[0] != batch:
            ow = jnp.broadcast_to(ow.reshape(1, -1),
                                  (batch, ow.reshape(1, -1).shape[-1]))
        o = emb_u[ow]                                        # (B, K, D)
        norm = jnp.sum(o * c[:, None, :], axis=-1)           # exact f32, no MXU
        return -jnp.mean(
            jnp.log(jnp.exp(scores) /
                    jnp.sum(jnp.exp(norm), axis=1, keepdims=True)))
    neg = jnp.sum(c * c, axis=-1, keepdims=True)
    return -jnp.mean(jax.nn.log_sigmoid(scores) + jax.nn.log_sigmoid(neg))


# ---------------------------------------------------------------------------
if __name__ == "__main__":
    vocab_size = 64
    projection_dim = 128   # lane-dense: multiple of 128
    batch = 20
    num_outer = 16
    batch_tile = 8         # small tile so the demo exercises 3 grid steps + masking

    key = jax.random.PRNGKey(0)
    kv, ku, kc, kt, ko = jax.random.split(key, 5)

    # Module init is embedding_v ~ U(-1, 1) and embedding_u = uniform_(0, 0) == 0.
    # Use a small non-zero embedding_u so the softmax / log-sigmoid math is
    # actually exercised; the forward math itself is unchanged.
    embedding_v = jax.random.uniform(
        kv, (vocab_size, projection_dim), jnp.float32, minval=-1.0, maxval=1.0)
    embedding_u = jax.random.uniform(
        ku, (vocab_size, projection_dim), jnp.float32, minval=-0.1, maxval=0.1)

    center_words = jax.random.randint(kc, (batch, 1), 0, vocab_size, jnp.int32)
    target_words = jax.random.randint(kt, (batch, 1), 0, vocab_size, jnp.int32)
    outer_words = jax.random.randint(ko, (num_outer,), 0, vocab_size, jnp.int32)

    ref_softmax = skipgram_reference(
        embedding_v, embedding_u, center_words, target_words, outer_words, ns=False)
    ref_ns = skipgram_reference(
        embedding_v, embedding_u, center_words, target_words, outer_words, ns=True)

    # Exercise BOTH gather strategies (the auto heuristic picks "pregather"
    # at D=128, "fused" at D>=512).
    for mode in ("pregather", "fused"):
        nll_softmax = skipgram_forward(
            embedding_v, embedding_u, center_words, target_words, outer_words,
            ns=False, batch_tile=batch_tile, gather_mode=mode)
        nll_ns = skipgram_forward(
            embedding_v, embedding_u, center_words, target_words, outer_words,
            ns=True, batch_tile=batch_tile, gather_mode=mode)
        jax.block_until_ready((nll_softmax, nll_ns))

        # The f32 MXU matmul for norm_scores may use reduced-precision passes
        # on some generations; allow a modest tolerance on that branch.
        assert jnp.allclose(nll_softmax, ref_softmax, atol=2e-3, rtol=2e-3), (
            mode, nll_softmax, ref_softmax)
        assert jnp.allclose(nll_ns, ref_ns, atol=1e-5, rtol=1e-5), (
            mode, nll_ns, ref_ns)

    print("KERNEL_OK")
</pallas_src>

<mosaic_0001>
module attributes {stable_mosaic.version = 11 : i64} {
  func.func @_sg_softmax_pregather_kernel(%arg0: i32, %arg1: memref<8x128xf32, #tpu.memory_space<vmem>>, %arg2: memref<8x128xf32, #tpu.memory_space<vmem>>, %arg3: memref<16x128xf32, #tpu.memory_space<vmem>>, %arg4: memref<1x8x128xf32, #tpu.memory_space<vmem>>) attributes {dimension_semantics = [#tpu.dimension_semantics<parallel>], iteration_bounds = array<i64: 3>, scalar_prefetch = 0 : i64, scratch_operands = 0 : i64, tpu.core_type = #tpu.core_type<tc>, window_params = [{transform_indices = @transform_0, window_bounds = array<i64: 8, 128>}, {transform_indices = @transform_1, window_bounds = array<i64: 8, 128>}, {pipeline_mode = #tpu.pipeline_mode<synchronous>, transform_indices = @transform_2, window_bounds = array<i64: 16, 128>}, {transform_indices = @transform_3, window_bounds = array<i64: 1, 8, 128>}]} {
    %c8_i32 = arith.constant 8 : i32
    %0 = arith.muli %arg0, %c8_i32 : i32
    %c0 = arith.constant 0 : index
    %c0_0 = arith.constant 0 : index
    %1 = vector.load %arg1[%c0, %c0_0] : memref<8x128xf32, #tpu.memory_space<vmem>>, vector<8x128xf32>
    %c0_1 = arith.constant 0 : index
    %c0_2 = arith.constant 0 : index
    %2 = vector.load %arg2[%c0_1, %c0_2] : memref<8x128xf32, #tpu.memory_space<vmem>>, vector<8x128xf32>
    %c0_3 = arith.constant 0 : index
    %c0_4 = arith.constant 0 : index
    %3 = vector.load %arg3[%c0_3, %c0_4] : memref<16x128xf32, #tpu.memory_space<vmem>>, vector<16x128xf32>
    %cst = arith.constant dense<0.000000e+00> : vector<8x16xf32>
    %4 = tpu.matmul %1, %3, %cst {dimension_numbers = #tpu.dot_dimension_numbers<[1], [1], [0], [0], [0, 0, 1, 0], [], []>} : vector<8x128xf32>, vector<16x128xf32>, vector<8x16xf32> -> vector<8x16xf32>
    %cst_5 = arith.constant dense<0xFF800000> : vector<8xf32>
    %5 = vector.multi_reduction <maximumf>, %4, %cst_5 [1] : vector<8x16xf32> to vector<8xf32>
    %6 = vector.shape_cast %5 : vector<8xf32> to vector<8x1xf32>
    %7 = vector.broadcast %6 : vector<8x1xf32> to vector<8x16xf32>
    %8 = arith.subf %4, %7 : vector<8x16xf32>
    %9 = math.exp %8 : vector<8x16xf32>
    %cst_6 = arith.constant dense<0.000000e+00> : vector<8xf32>
    %10 = vector.multi_reduction <add>, %9, %cst_6 [1] : vector<8x16xf32> to vector<8xf32>
    %11 = vector.shape_cast %10 : vector<8xf32> to vector<8x1xf32>
    %12 = math.log %11 : vector<8x1xf32>
    %13 = arith.addf %6, %12 : vector<8x1xf32>
    %14 = arith.mulf %2, %1 : vector<8x128xf32>
    %cst_7 = arith.constant dense<0.000000e+00> : vector<8xf32>
    %15 = vector.multi_reduction <add>, %14, %cst_7 [1] : vector<8x128xf32> to vector<8xf32>
    %16 = vector.shape_cast %15 : vector<8xf32> to vector<8x1xf32>
    %17 = arith.subf %16, %13 : vector<8x1xf32>
    %18 = tpu.iota {dimensions = array<i32: 0>} : vector<8x1xi32>
    %19 = vector.broadcast %0 : i32 to vector<8x1xi32>
    %20 = arith.addi %19, %18 : vector<8x1xi32>
    %c20_i32 = arith.constant 20 : i32
    %21 = vector.broadcast %c20_i32 : i32 to vector<8x1xi32>
    %22 = arith.cmpi slt, %20, %21 : vector<8x1xi32>
    %cst_8 = arith.constant 0.000000e+00 : f32
    %23 = vector.broadcast %cst_8 : f32 to vector<8x1xf32>
    %24 = arith.select %22, %17, %23 : vector<8x1xi1>, vector<8x1xf32>
    %25 = vector.shape_cast %24 : vector<8x1xf32> to vector<1x8x1xf32>
    %cst_9 = arith.constant dense<0.000000e+00> : vector<1xf32>
    %26 = vector.multi_reduction <add>, %25, %cst_9 [1, 2] : vector<1x8x1xf32> to vector<1xf32>
    %27 = vector.shape_cast %26 : vector<1xf32> to vector<1x1x1xf32>
    %28 = vector.extract %27[0, 0, 0] : f32 from vector<1x1x1xf32>
    %29 = tpu.iota {dimensions = array<i32: 1>} : vector<1x8x128xi32>
    %30 = tpu.iota {dimensions = array<i32: 2>} : vector<1x8x128xi32>
    %c0_i32 = arith.constant 0 : i32
    %31 = vector.broadcast %c0_i32 : i32 to vector<1x8x128xi32>
    %32 = arith.cmpi eq, %29, %31 : vector<1x8x128xi32>
    %c0_i32_10 = arith.constant 0 : i32
    %33 = vector.broadcast %c0_i32_10 : i32 to vector<1x8x128xi32>
    %34 = arith.cmpi eq, %30, %33 : vector<1x8x128xi32>
    %35 = arith.andi %32, %34 : vector<1x8x128xi1>
    %cst_11 = arith.constant 0.000000e+00 : f32
    %36 = vector.broadcast %28 : f32 to vector<1x8x128xf32>
    %37 = vector.broadcast %cst_11 : f32 to vector<1x8x128xf32>
    %38 = arith.select %35, %36, %37 : vector<1x8x128xi1>, vector<1x8x128xf32>
    %c0_12 = arith.constant 0 : index
    %c0_13 = arith.constant 0 : index
    %c0_14 = arith.constant 0 : index
    %39 = vector.load %arg4[%c0_12, %c0_13, %c0_14] : memref<1x8x128xf32, #tpu.memory_space<vmem>>, vector<1x8x128xf32>
    tpu.vector_store %arg4[%c0_12, %c0_13, %c0_14], %38 {strides = array<i32>} : memref<1x8x128xf32, #tpu.memory_space<vmem>>, vector<1x8x128xf32>,
    return
  }
  func.func @transform_0(%arg0: i32) -> (i32, i32) {
    %c0_i32 = arith.constant 0 : i32
    %c0_i32_0 = arith.constant 0 : i32
    return %arg0, %c0_i32 : i32, i32
  }
  func.func @transform_1(%arg0: i32) -> (i32, i32) {
    %c0_i32 = arith.constant 0 : i32
    %c0_i32_0 = arith.constant 0 : i32
    return %arg0, %c0_i32 : i32, i32
  }
  func.func @transform_2(%arg0: i32) -> (i32, i32) {
    %c0_i32 = arith.constant 0 : i32
    %c0_i32_0 = arith.constant 0 : i32
    %c0_i32_1 = arith.constant 0 : i32
    return %c0_i32, %c0_i32_0 : i32, i32
  }
  func.func @transform_3(%arg0: i32) -> (i32, i32, i32) {
    %c0_i32 = arith.constant 0 : i32
    %c0_i32_0 = arith.constant 0 : i32
    %c0_i32_1 = arith.constant 0 : i32
    return %arg0, %c0_i32, %c0_i32_0 : i32, i32, i32
  }
}

</mosaic_0001>

<bundles_post_ra>
// kernel: tpu_custom_call.1
= control target key start
LH: loop header
LB: loop body
LE: loop exit
PB: predicated region body
PF: predicated region fallthrough
CT: control target
= control target key end

     0   :  { %8 = vsyncpa [#allocation3], 0  ;;  %s994_s0 = inlined_call_operand.hbm [shape: f32[24,128], index: 0, kind: input, shape index: {}]   ;;  %s995_s1 = inlined_call_operand.hbm [shape: f32[24,128], index: 1, kind: input, shape index: {}]   ;;  %s996_s2 = inlined_call_operand.hbm [shape: f32[16,128], index: 2, kind: input, shape index: {}]   ;;  %s997_s3 = inlined_call_operand.hbm [shape: f32[3,8,128], index: 3, kind: output, shape index: {}]  }
   0x1   :  { %10 = vsyncpa [#allocation3 + $0x1], 0 }
   0x2   :  { %11 = vsyncpa [#allocation6], 0 }
   0x3   :  { %13 = vsyncpa [#allocation6 + $0x1], 0 }
   0x4   :  { %14 = vsyncpa [#allocation4], 0 }
   0x5   :  { %16 = vsyncpa [#allocation4 + $0x1], 0  ;;  %s767_s12 = smov 0   ;;  %s769_s13 = smov 0  }
   0x6   :  { %s771_s14 = smov 0   ;;  %s773_s15 = smov 0  }
   0x7 LB: > { %s788_s16 = sadd.s32 4294967295, %s736_s15   ;;  %s470_s17 = sadd.s32 4294967294, %s736_s15   ;;  %s736_s15 = sphi %s773_s15, %s1018_s15   ;;  %s732_s14 = sphi %s771_s14, %s1017_s14   ;;  %s728_s13 = sphi %s769_s13, %s1016_s13   ;;  %s724_s12 = sphi %s767_s12, %s1015_s12  }
   0x8   : > { %p42_p0 = scmp.ne.s32.totalorder %s728_s13, %s724_s12  ;;  %p998_p1 = scmp.eq.s32.totalorder %s788_s16, 0 }
   0x9   : > { %p119_p3 = scmp.eq.s32.totalorder %s470_s17, 2  ;;  %p471_p5 = scmp.ge.s32.totalorder %s736_s15, 1 }
   0xa   : > { %p797_p4 = por %p998_p1, %p42_p0  ;;  %p126_p7 = scmp.lt.s32.totalorder %s736_s15, 4 }
   0xb   : > { %p802_p6 = por %p119_p3, %p42_p0  ;;  %s738_s21 = smov [#allocation7]  }
   0xc   : > { %s1002_s18 = scalar_select %p797_p4, 1, 0 }
   0xd   : > { %s1003_s19 = scalar_select %p802_p6, 1, 0 }
   0xe   : > { %p807_p8 = pnand %p471_p5, %p126_p7  ;;  %s138_s22 = sshll.u32 %s738_s21, 4  ;;  %s139_s22 = int_to_ptr.vmem [resolvable:$true] %s138_s22 }
   0xf   : > { %s820_s24 = sadd.s32 1, %s736_s15   ;;  %s29_s25 = sadd.s32 1, %s732_s14 }
  0x10   : > { %s1004_s20 = scalar_select %p807_p8, 1, 0 }
  0x11   : > { %p513_p9 = pneg %p807_p8  ;;  %s26_s26 = ssub.s32 %s736_s15, %s820_s24 }
  0x12   : > { %s574_s29 = scalar_lea.hbm %s996_s2, 256 }
  0x13   : > { %p815_p10 = pnand %p513_p9, %p998_p1  ;;  %p575_p11 = scmp.ne.s32.totalorder %s996_s2, %s574_s29 }
  0x14   : > { %p581_p3 = scmp.lt.u32.totalorder %s574_s29, %s996_s2 }
  0x15   : > { %p576_p12 = pneg %p815_p10 }
  0x17   : > { %p577_p13 = pnand %p576_p12, %p575_p11 }
  0x19   : > { %p578_p0 = pneg %p577_p13 }
  0x1b   : > { %p583_p5 = pnand %p581_p3, %p578_p0 }
  0x1d   : > { %586 = shalt.err (!%p583_p5)
}
  0x1e   : > { %s587_s7 = scalar_lea.vmem %s139_s22, 256  ;;  %p595_p2 = scmp.lt.s32.totalorder %s139_s22, %s139_s22 }
  0x1f   : > { %p588_p7 = scmp.ne.s32.totalorder %s139_s22, %s587_s7  ;;  %p596_p6 = scmp.lt.s32.totalorder %s587_s7, %s587_s7 }
  0x21   : > { %p590_p9 = pnand %p588_p7, %p576_p12  ;;  %p597_p4 = por %p596_p6, %p595_p2 }
  0x23   : > { %p591_p1 = pneg %p590_p9 }
  0x25   : > { %p598_p8 = pnand %p597_p4, %p591_p1 }
  0x27   : > { %601 = shalt.err (!%p598_p8)
}
  0x28   : > { %s739_s8 = smov 128   ;;  %s740_s9 = smov 8  }
  0x29   : > { %516 = dma.hbm_to_vmem [thread:$0]  (!%p815_p10), %s996_s2, 256, %s139_s22, [#allocation6], %s739_s8, %s739_s8, %s740_s9  }
  0x2a   : > { %p27_p11 = scmp.eq.s32.totalorder %s26_s26, 0  ;;  %p36_p2 = scmp.ne.s32.totalorder %s732_s14, %s728_s13 }
  0x2b   : > { %p37_p1 = scmp.eq.s32.totalorder %s736_s15, 0  ;;  %p529_p4 = scmp.lt.s32.totalorder %s736_s15, 3 }
  0x2c   : > { %s846_s17 = scalar_select %p27_p11, %s732_s14, %s29_s25  }
  0x2d   : > { %p38_p6 = por %p37_p1, %p36_p2  ;;  %p1006_p8 = scmp.eq.s32.totalorder %s788_s16, 2 }
  0x2e   : > { %s152_s27 = sand.u32 1, %s732_s14   ;;  %s475_s28 = sshll.u32 %s736_s15, 7 }
  0x2f   : > { %p850_p12 = por %p1006_p8, %p36_p2  ;;  %s856_s29 = sshll.u32 %s152_s27, 3 }
  0x30   : > { %s861_s22 = scalar_lea.hbm %s994_s0, %s475_s28  ;;  %s156_s25 = scalar_lea.vmem [#allocation2], %s856_s29 }
  0x31   : > { %s1007_s21 = scalar_select %p850_p12, 1, 0 }
  0x32   : > { %s163_s26 = sshll.u32 %s156_s25, 4  ;;  %p864_p10 = pnand %p529_p4, %p38_p6  ;;  %s868_s26 = int_to_ptr.vmem [resolvable:$true] %s163_s26 }
  0x33   : > { %s873_s7 = scalar_lea.hbm %s995_s1, %s475_s28  ;;  %s153_s8 = scalar_lea.sflag [#allocation3], %s152_s27 }
  0x34   : > { %s602_s9 = scalar_lea.hbm %s861_s22, 128  ;;  %p604_p0 = pneg %p864_p10 }
  0x35   : > { %p603_p13 = scmp.ne.s32.totalorder %s861_s22, %s602_s9  ;;  %s607_s23 = scalar_lea.hbm %s994_s0, 384 }
  0x36   : > { %p608_p7 = scmp.lt.u32.totalorder %s861_s22, %s994_s0  ;;  %p609_p9 = scmp.lt.u32.totalorder %s607_s23, %s602_s9 }
  0x37   : > { %p605_p3 = pnand %p604_p0, %p603_p13  ;;  %p611_p2 = scmp.lt.u32.totalorder %s602_s9, %s861_s22 }
  0x38   : > { %p610_p11 = por %p609_p9, %p608_p7 }
  0x39   : > { %p606_p5 = pneg %p605_p3 }
  0x3a   : > { %p612_p1 = por %p611_p2, %p610_p11 }
  0x3c   : > { %p613_p4 = pnand %p612_p1, %p606_p5 }
  0x3e   : > { %616 = shalt.err (!%p613_p4)
}
  0x3f   : > { %s617_s27 = scalar_lea.vmem %s868_s26, 128  ;;  %s741_s28 = smov [#allocation2]  }
  0x40   : > { %p618_p6 = scmp.ne.s32.totalorder %s868_s26, %s617_s27  ;;  %s622_s5 = sshll.u32 %s741_s28, 4  ;;  %s623_s5 = int_to_ptr.vmem [resolvable:$false] %s622_s5 }
  0x41   : > { %s624_s6 = scalar_lea.vmem %s623_s5, 256  ;;  %p625_p3 = scmp.lt.s32.totalorder %s868_s26, %s623_s5 }
  0x42   : > { %p620_p8 = pnand %p618_p6, %p604_p0  ;;  %p626_p7 = scmp.lt.s32.totalorder %s624_s6, %s617_s27 }
  0x44   : > { %p621_p13 = pneg %p620_p8  ;;  %p627_p9 = por %p626_p7, %p625_p3 }
  0x46   : > { %p628_p11 = pnand %p627_p9, %p621_p13 }
  0x48   : > { %631 = shalt.err (!%p628_p11)
}
  0x49   : > { %520 = dma.hbm_to_vmem [thread:$0]  (!%p864_p10), %s861_s22, 128, %s868_s26, %s153_s8  }
  0x4a   : > { %s170_s9 = sand.u32 1, %s736_s15   ;;  %s174_s10 = scalar_lea.vmem [#allocation5], %s856_s29 }
  0x4b   : > { %s181_s11 = sshll.u32 %s174_s10, 4  ;;  %s171_s23 = scalar_lea.sflag [#allocation6], %s170_s9  ;;  %s182_s11 = int_to_ptr.vmem [resolvable:$true] %s181_s11 }
  0x4c   : > { %s632_s30 = scalar_lea.hbm %s873_s7, 128  ;;  %s637_s28 = scalar_lea.hbm %s995_s1, 384 }
  0x4d   : > { %p633_p5 = scmp.ne.s32.totalorder %s873_s7, %s632_s30  ;;  %p638_p4 = scmp.lt.u32.totalorder %s873_s7, %s995_s1 }
  0x4e   : > { %p639_p6 = scmp.lt.u32.totalorder %s637_s28, %s632_s30  ;;  %p641_p13 = scmp.lt.u32.totalorder %s632_s30, %s873_s7 }
  0x4f   : > { %p635_p2 = pnand %p633_p5, %p604_p0 }
  0x50   : > { %p640_p8 = por %p639_p6, %p638_p4 }
  0x51   : > { %p636_p1 = pneg %p635_p2 }
  0x52   : > { %p642_p3 = por %p641_p13, %p640_p8 }
  0x54   : > { %p643_p7 = pnand %p642_p3, %p636_p1 }
  0x56   : > { %646 = shalt.err (!%p643_p7)
}
  0x57   : > { %s647_s29 = scalar_lea.vmem %s182_s11, 128  ;;  %s742_s22 = smov [#allocation5]  }
  0x58   : > { %p648_p9 = scmp.ne.s32.totalorder %s182_s11, %s647_s29  ;;  %s652_s26 = sshll.u32 %s742_s22, 4  ;;  %s653_s26 = int_to_ptr.vmem [resolvable:$false] %s652_s26 }
  0x59   : > { %s654_s8 = scalar_lea.vmem %s653_s26, 256  ;;  %p655_p2 = scmp.lt.s32.totalorder %s182_s11, %s653_s26 }
  0x5a   : > { %p650_p11 = pnand %p648_p9, %p604_p0  ;;  %p656_p12 = scmp.lt.s32.totalorder %s654_s8, %s647_s29 }
  0x5c   : > { %p651_p5 = pneg %p650_p11  ;;  %p657_p4 = por %p656_p12, %p655_p2 }
  0x5e   : > { %p658_p6 = pnand %p657_p4, %p651_p5 }
  0x60   : > { %661 = shalt.err (!%p658_p6)
}
  0x61   : > { %523 = dma.hbm_to_vmem [thread:$0]  (!%p864_p10), %s873_s7, 128, %s182_s11, %s171_s23  }
  0x62   : > { %p1009_p1 = scmp.ne.s32.totalorder %s1004_s20, 0 }
  0x63   : > { %s924_s9 = sand.u32 (!%p1009_p1), 1, %s728_s13   ;;  %p1010_p12 = scmp.ne.s32.totalorder (!%p1009_p1), %s1002_s18, 0 }
  0x64   : > { %190 = sbr.rel (%p1009_p1) target bundleno = 876 (0x36c), region = 32  ;;  %s927_s10 = sshll.u32 (!%p1009_p1), %s924_s9, 3 }
  0x65   : > { %s193_s30 = scalar_lea.sflag (!%p1009_p1), [#allocation3], %s924_s9  ;;  %s196_s25 = scalar_lea.vmem (!%p1009_p1), [#allocation2], %s927_s10 }
  0x6b   : > { %707 = dma.done.wait (%p1010_p12), %s193_s30, 128  }
  0x6c   : > { %709 = vsyncadd (%p1010_p12), %s193_s30, 4294967168  ;;  %s201_s20 = sand.u32 1, %s788_s16   ;;  %s205_s7 = scalar_lea.vmem [#allocation5], %s927_s10 }
  0x6d   : > { %s202_s4 = scalar_lea.sflag [#allocation6], %s201_s20 }
  0x6e   : > { %711 = dma.done.wait (%p1010_p12), %s202_s4, 128  }
  0x6f   : > { %713 = vsyncadd (%p1010_p12), %s202_s4, 4294967168  ;;  %p1011_p10 = scmp.eq.s32.totalorder %s788_s16, 0 }
  0x71   : > { %715 = dma.done.wait (%p1011_p10), [#allocation6], 256   ;;  %p1012_p0 = pmov %p1011_p10 }
  0x72   : > { %v743_v0 = vmov 0.0|0.0   ;;  %vm744_vm0 = vmmov 0   ;;  %v745_v1 = vmov 0.0   ;;  %v240_v2 = vld [vmem:[#allocation7] sm:$0xff]  ;;  %v241_v3 = vld [vmem:[#allocation7 + $0x8] sm:$0xff]  ;;  %vm312_vm1 = vcmask 130048  }
  0x73   : > { %717 = vsyncadd (%p1012_p0), [#allocation6], 4294967040  ;;  %498 = vmatprep.subr.bf16.mxu0 %v743_v0  ;;  %495 = vmatprep.mubr.msk.f32.mxu0 %vm744_vm0, %v745_v1  ;;  %v499_v4 = vpack.c.bf16 %v241_v3, %v240_v2  ;;  %v238_v5 = vld [vmem:[%s196_s25] sm:$0xff]  ;;  %v239_v9 = vld [vmem:[%s205_s7] sm:$0xff]  ;;  %v329_v17 = vlaneseq  ;;  %s483_s18 = sshll.u32 %s788_s16, 3  ;;  %vm335_vm3 = vcmask 7168  }
  0x74   : > { %v325_v10 = vmul.f32 %v239_v9, %v238_v5  ;;  %v331_v19 = vstv %s483_s18  ;;  %s485_s11 = sshll.u32 %s788_s16, 7  ;;  %s236_s23 = scalar_lea.vmem [#allocation8], %s927_s10 }
  0x75   : > { %500 = vmatpush3.bf16.xpose.msra.mxu0 %v499_v4  ;;  %v330_v18 = vshrl.u32 %v329_v17, 7  ;;  %v347_v35 = vand.u32 127, %v329_v17  ;;  %s368_s27 = sshll.u32 %s236_s23, 4  ;;  %s951_s29 = scalar_lea.hbm %s997_s3, %s485_s11  ;;  %s953_s27 = int_to_ptr.vmem [resolvable:$true] %s368_s27 }
  0x76   : > { %326 = vadd.xlane.f32.xlu1 %v325_v10  ;;  %s355_s22 = scalar_lea.sflag [#allocation4], %s924_s9  ;;  %s662_s26 = scalar_lea.vmem %s953_s27, 128 }
  0x77   : > { %v332_v21 = vadd.s32 %v331_v19, %v330_v18  ;;  %vm348_vm4 = vcmp.eq.s32.totalorder %v330_v18, 0  ;;  %vm349_vm5 = vcmp.eq.s32.totalorder %v347_v35, 0  ;;  %p663_p8 = scmp.ne.s32.totalorder %s953_s27, %s662_s26  ;;  %p1013_p13 = scmp.ne.s32.totalorder %s1007_s21, 0 }
  0x78   : > { %vm350_vm6 = vmand %vm348_vm4, %vm349_vm5  ;;  %s746_s16 = smov [#allocation8]  }
  0x79   : > { %vm333_vm2 = vcmp.lt.s32.totalorder %v332_v21, 20  ;;  %p664_p3 = pnand %p663_p8, %p1013_p13  ;;  %s666_s8 = sshll.u32 %s746_s16, 4  ;;  %s667_s8 = int_to_ptr.vmem [resolvable:$false] %s666_s8 }
  0x7a   : > { %s668_s10 = scalar_lea.vmem %s667_s8, 256  ;;  %p669_p9 = scmp.lt.s32.totalorder %s953_s27, %s667_s8 }
  0x7b   : > { %p665_p7 = pneg %p664_p3  ;;  %p670_p11 = scmp.lt.s32.totalorder %s668_s10, %s662_s26 }
  0x7c   : > { %496 = vmatmul.mubr.f32.vlgmr.msra.gmra.mrb[0].mxu0 %v238_v5 }
  0x7d   : > { %p671_p5 = por %p670_p11, %p669_p9 }
  0x7f   : > { %p672_p2 = pnand %p671_p5, %p665_p7 }
 0x103   : > { %v327_v23 = vpop.xlane.xlu1 %326 }
 0x14f   : > { %v308_v6 = vpop.f32.mrb[0].mxu0 }
 0x150   : > { %v497_v7 = vpop.f32.mrb[1].mxu0  ;;  %v313_v8 = vsel %vm312_vm1, %v308_v6, -inf }
 0x151   : > { %314 = vmax.xlane.f32.xlu0 %v313_v8 }
 0x1de   : > { %v315_v11 = vpop.xlane.xlu0 %314 }
 0x1df   : > { %v316_v12 = vsub.f32 %v308_v6, %v315_v11 }
 0x1e1   : > { %v317_v13 = vmul.f32 1.442695, %v316_v12 }
 0x1e3   : > { %570 = vpow2.f32 %v317_v13 }
 0x1ed   : > { %v571_v14 = vpop.eup %570 }
 0x1ee   : > { %v319_v15 = vsel %vm312_vm1, %v571_v14, 0.0 }
 0x1ef   : > { %320 = vadd.xlane.f32.xlu0 %v319_v15 }
 0x27c   : > { %v321_v16 = vpop.xlane.xlu0 %320 }
 0x27d   : > { %572 = vlog2.f32 %v321_v16 }
 0x287   : > { %v573_v20 = vpop.eup %572 }
 0x288   : > { %v323_v22 = vmul.f32 0.6931472, %v573_v20 }
 0x28a   : > { %v324_v24 = vadd.f32 %v323_v22, %v315_v11 }
 0x28c   : > { %v328_v25 = vsub.f32 %v327_v23, %v324_v24 }
 0x28e   : > { %v334_v26 = vsel %vm333_vm2, %v328_v25, 0.0 }
 0x28f   : > { %v336_v27 = vsel %vm335_vm3, %v334_v26, 0.0 }
 0x290   : > { %337 = vadd.xlane.f32.xlu1 %v336_v27 }
 0x31d   : > { %v338_v28 = vpop.xlane.xlu1 %337 }
 0x31e   : > { %v339_v29 = vrot.slane %v338_v28, 4 }
 0x320   : > { %v340_v30 = vadd.f32 %v339_v29, %v338_v28 }
 0x322   : > { %v341_v31 = vrot.slane %v340_v30, 2 }
 0x324   : > { %v342_v32 = vadd.f32 %v341_v31, %v340_v30 }
 0x326   : > { %v343_v33 = vrot.slane %v342_v32, 1 }
 0x328   : > { %v344_v34 = vadd.f32 %v343_v33, %v342_v32 }
 0x32a   : > { %501 = vpush %v344_v34 }
 0x35b   : > { %s502_s28 = spop %501 }
 0x35c   : > { %v351_v36 = vstv %s502_s28 }
 0x35d   : > { %v352_v37 = vsel %vm350_vm6, %v351_v36, 0.0 }
 0x35e   : > { %353 = vst [vmem:[%s236_s23] sm:$0xff] %v352_v37 }
 0x35f   : > { %675 = shalt.err (!%p672_p2)
}
 0x360   : > { %s676_s9 = scalar_lea.hbm %s951_s29, 128  ;;  %s680_s20 = scalar_lea.hbm %s997_s3, 384 }
 0x361   : > { %p677_p4 = scmp.ne.s32.totalorder %s951_s29, %s676_s9  ;;  %p681_p12 = scmp.lt.u32.totalorder %s951_s29, %s997_s3 }
 0x362   : > { %p682_p10 = scmp.lt.u32.totalorder %s680_s20, %s676_s9  ;;  %p684_p8 = scmp.lt.u32.totalorder %s676_s9, %s951_s29 }
 0x363   : > { %p678_p6 = pnand %p677_p4, %p1013_p13 }
 0x364   : > { %p683_p0 = por %p682_p10, %p681_p12 }
 0x365   : > { %p679_p1 = pneg %p678_p6 }
 0x366   : > { %p685_p3 = por %p684_p8, %p683_p0 }
 0x368   : > { %p686_p7 = pnand %p685_p3, %p679_p1 }
 0x36a   : > { %689 = shalt.err (!%p686_p7)
}
 0x36b   : > { %511 = dma.vmem_to_hbm [thread:$0]  (%p1013_p13), %s953_s27, 128, %s951_s29, %s355_s22  }
 0x36c PF: > { %p531_p9 = scmp.ge.s32.totalorder %s736_s15, 2  ;;  %s380_s18 = sand.u32 1, %s724_s12  }
 0x36d   : > { %p1014_p11 = scmp.ne.s32.totalorder %s1003_s19, 0  ;;  %s381_s11 = scalar_lea.sflag [#allocation4], %s380_s18 }
 0x36f   : > { %p525_p5 = pnand %p531_p9, %p1014_p11 }
 0x371   : > { %719 = dma.done.wait (!%p525_p5), %s381_s11, 128  }
 0x372   : > { %721 = vsyncadd (!%p525_p5), %s381_s11, 4294967168  ;;  %p19_p2 = scmp.ge.s32.totalorder %s820_s24, 5   ;;  %s1015_s12 = smov %s728_s13 }
 0x373   : > { %s1016_s13 = smov %s732_s14  ;;  %s1017_s14 = smov %s846_s17 }
 0x374   : > { %s1018_s15 = smov %s820_s24  ;;  %21 = sbr.rel (!%p19_p2) target bundleno = 7 (0x7), region = 94 }
 0x37b   :  { %386 = vsyncpa [#allocation3], 1 }
 0x37c   :  { %388 = vsyncpa [#allocation3 + $0x1], 1 }
 0x37d   :  { %389 = vsyncpa [#allocation6], 1 }
 0x37e   :  { %391 = vsyncpa [#allocation6 + $0x1], 1 }
 0x37f   :  { %392 = vsyncpa [#allocation4], 1 }
 0x380   :  { %394 = vsyncpa [#allocation4 + $0x1], 1 }

</bundles_post_ra>
